<compile_context>
chip_gen: v6e
topology: v6e:2x2x1
jax: 0.10.0
libtpu: 0.0.40
codegen_flags: <defaults>
</compile_context>

<pallas_src>
import functools

import jax
import jax.numpy as jnp
from jax.experimental import pallas as pl
from jax.experimental.pallas import tpu as pltpu


# ---------------------------------------------------------------------------
# Small static tiling helpers.
# ---------------------------------------------------------------------------
def _largest_divisor_le(n, cap):
    for d in range(min(cap, n), 0, -1):
        if n % d == 0:
            return d
    return 1


def _pick_batch_block(n):
    # >=2 blocks when the batch is large enough (megacore), else a single block.
    if n >= 16 and n % 16 == 0:
        return n // 2
    return n


def _row_block(m, target=256):
    if m <= target:
        return m
    for d in range(target, 7, -1):
        if m % d == 0 and d % 8 == 0:
            return d
    return m


# ---------------------------------------------------------------------------
# Generic blocked dense kernel: y = sum_k x_k @ w_k + b, optional ReLU.
# Used for the hoisted LSTM input projection (pre-gates).
# ---------------------------------------------------------------------------
def _multi_dense_kernel(*refs, n_in, relu):
    o_ref = refs[-1]
    b_ref = refs[-2]
    acc = jnp.dot(refs[0][...], refs[n_in][...], preferred_element_type=jnp.float32)
    for k in range(1, n_in):
        acc = acc + jnp.dot(refs[k][...], refs[n_in + k][...],
                            preferred_element_type=jnp.float32)
    acc = acc + b_ref[...]
    if relu:
        acc = jnp.maximum(acc, 0.0)
    o_ref[...] = acc


def multi_dense(xs, ws, b, relu=False):
    M = xs[0].shape[0]
    Dout = ws[0].shape[1]
    TM = _row_block(M)
    args, in_specs = [], []
    for x in xs:
        args.append(x)
        in_specs.append(pl.BlockSpec((TM, x.shape[1]), lambda i: (i, 0)))
    for w in ws:
        args.append(w)
        in_specs.append(pl.BlockSpec(w.shape, lambda i: (0, 0)))
    args.append(b.reshape(1, Dout))
    in_specs.append(pl.BlockSpec((1, Dout), lambda i: (0, 0)))
    return pl.pallas_call(
        functools.partial(_multi_dense_kernel, n_in=len(xs), relu=relu),
        out_shape=jax.ShapeDtypeStruct((M, Dout), jnp.float32),
        grid=(M // TM,),
        in_specs=in_specs,
        out_specs=pl.BlockSpec((TM, Dout), lambda i: (i, 0)),
        compiler_params=pltpu.CompilerParams(dimension_semantics=("parallel",)),
    )(*args)


# ---------------------------------------------------------------------------
# Fused bidirectional LSTM recurrence.  Pre-gates (x @ W_ih + b) are inputs, so
# the serial loop only does h @ W_hh + gate nonlinearities.  Grid:
# (batch blocks ['parallel'], time blocks ['arbitrary']); TB timesteps per step.
# Packed-sequence semantics: state updates only while t < length[b]; outputs at
# padded positions are 0; gate order i, f, g, o; both directions start from 0.
# ---------------------------------------------------------------------------
def _bilstm_kernel(len_ref, gxf_ref, gxb_ref, whf_ref, whb_ref,
                   outf_ref, outb_ref, hf, cf, hb, cb, *, TB, H, T):
    tb = pl.program_id(1)                      # time-block index (minor axis)

    @pl.when(tb == 0)
    def _():                                   # zero init at the start of each batch block
        hf[...] = jnp.zeros_like(hf)
        cf[...] = jnp.zeros_like(cf)
        hb[...] = jnp.zeros_like(hb)
        cb[...] = jnp.zeros_like(cb)

    lens = len_ref[...]                        # (NB, 1) float32 sequence lengths
    whf = whf_ref[...]
    whb = whb_ref[...]

    def gates(pre, h, w_hh):
        g = pre + jnp.dot(h, w_hh, preferred_element_type=jnp.float32)   # (NB, 4H)
        i_g = jax.nn.sigmoid(g[:, 0:H])
        f_g = jax.nn.sigmoid(g[:, H:2 * H])
        g_g = jnp.tanh(g[:, 2 * H:3 * H])
        o_g = jax.nn.sigmoid(g[:, 3 * H:4 * H])
        return i_g, f_g, g_g, o_g

    # Statically unrolled inner loop over the TB timesteps of this block.
    for i in range(TB):
        # ---- forward direction: absolute time t = tb*TB + i
        t_f = (tb * TB + i).astype(jnp.float32)
        valid_f = lens > t_f                                  # (NB, 1) bool
        i_g, f_g, g_g, o_g = gates(gxf_ref[i], hf[...], whf)
        c_new = f_g * cf[...] + i_g * g_g
        h_new = o_g * jnp.tanh(c_new)
        hf[...] = jnp.where(valid_f, h_new, hf[...])          # freeze past end of seq
        cf[...] = jnp.where(valid_f, c_new, cf[...])
        outf_ref[i] = jnp.where(valid_f, h_new, 0.0)          # pad_packed pads with 0

        # ---- backward direction: absolute time t = T-1 - (tb*TB + i)
        j = TB - 1 - i                                        # row inside reversed block
        t_b = (T - 1 - tb * TB - i).astype(jnp.float32)
        valid_b = lens > t_b
        i_g, f_g, g_g, o_g = gates(gxb_ref[j], hb[...], whb)
        c_new = f_g * cb[...] + i_g * g_g
        h_new = o_g * jnp.tanh(c_new)
        hb[...] = jnp.where(valid_b, h_new, hb[...])
        cb[...] = jnp.where(valid_b, c_new, cb[...])
        outb_ref[j] = jnp.where(valid_b, h_new, 0.0)


def bilstm_layer(gxf, gxb, w_hh_f, w_hh_b, lens_col, hidden_size):
    """gxf/gxb: (T, N, 4H) pre-gates. Returns (out_fwd, out_bwd), each (T, N, H)."""
    T, N, G = gxf.shape
    H = hidden_size
    TB = _largest_divisor_le(T, 8)
    NB = _pick_batch_block(N)
    ntb = T // TB
    nbb = N // NB

    kernel = functools.partial(_bilstm_kernel, TB=TB, H=H, T=T)
    outf, outb = pl.pallas_call(
        kernel,
        out_shape=(jax.ShapeDtypeStruct((T, N, H), jnp.float32),
                   jax.ShapeDtypeStruct((T, N, H), jnp.float32)),
        grid=(nbb, ntb),
        in_specs=[
            pl.BlockSpec((NB, 1), lambda b, t: (b, 0)),
            pl.BlockSpec((TB, NB, G), lambda b, t: (t, b, 0)),
            pl.BlockSpec((TB, NB, G), lambda b, t: (ntb - 1 - t, b, 0)),
            pl.BlockSpec((H, G), lambda b, t: (0, 0)),
            pl.BlockSpec((H, G), lambda b, t: (0, 0)),
        ],
        out_specs=[pl.BlockSpec((TB, NB, H), lambda b, t: (t, b, 0)),
                   pl.BlockSpec((TB, NB, H), lambda b, t: (ntb - 1 - t, b, 0))],
        scratch_shapes=[pltpu.VMEM((NB, H), jnp.float32)] * 4,
        compiler_params=pltpu.CompilerParams(
            dimension_semantics=("parallel", "arbitrary")),
    )(lens_col, gxf, gxb, w_hh_f, w_hh_b)
    return outf, outb


# ---------------------------------------------------------------------------
# MLAttention (batched): logits = x @ W_a^T  -> masked softmax over T -> att^T @ x
# ---------------------------------------------------------------------------
def _mlattention_kernel(x_ref, m_ref, w_ref, o_ref):
    nb, t, d = x_ref.shape
    l = w_ref.shape[1]
    x = x_ref[...]                                            # (NB, T, D)
    logits = jnp.dot(x.reshape(nb * t, d), w_ref[...],
                     preferred_element_type=jnp.float32).reshape(nb, t, l)
    # finite large-negative instead of -inf (avoids NaN when a row is fully masked)
    logits = jnp.where(m_ref[...] > 0.0, logits, jnp.float32(-1e30))
    logits = logits - jnp.max(logits, axis=1, keepdims=True)
    e = jnp.exp(logits)
    denom = jnp.sum(e, axis=1, keepdims=True)                 # (NB, 1, L)
    att = e * pl.reciprocal(denom, approx=True)               # softmax over T
    o_ref[...] = jax.lax.dot_general(                         # (NB, L, D)
        att, x, (((1,), (1,)), ((0,), (0,))), preferred_element_type=jnp.float32)


def ml_attention(rnn_out, mask, w_att):
    """rnn_out: (N, T, D), mask: (N, T), w_att: (L, D). Returns (N, L, D)."""
    N, T, D = rnn_out.shape
    L = w_att.shape[0]
    NB = _pick_batch_block(N)
    m3 = mask[:, :, None]                                     # (N, T, 1)
    w_T = jnp.transpose(w_att)                                # (D, L)
    return pl.pallas_call(
        _mlattention_kernel,
        out_shape=jax.ShapeDtypeStruct((N, L, D), jnp.float32),
        grid=(N // NB,),
        in_specs=[
            pl.BlockSpec((NB, T, D), lambda n: (n, 0, 0)),
            pl.BlockSpec((NB, T, 1), lambda n: (n, 0, 0)),
            pl.BlockSpec((D, L), lambda n: (0, 0)),
        ],
        out_specs=pl.BlockSpec((NB, L, D), lambda n: (n, 0, 0)),
        compiler_params=pltpu.CompilerParams(dimension_semantics=("parallel",)),
    )(rnn_out, m3, w_T)


# ---------------------------------------------------------------------------
# Fused MLLinear: all relu hidden layers + output linear in one kernel,
# intermediates stay in VMEM.
# ---------------------------------------------------------------------------
def _fused_mlp_kernel(*refs, n_hidden):
    x_ref = refs[0]
    o_ref = refs[-1]
    h = x_ref[...]
    p = 1
    for _ in range(n_hidden):
        w = refs[p][...]
        b = refs[p + 1][...]
        p += 2
        h = jnp.maximum(jnp.dot(h, w, preferred_element_type=jnp.float32) + b, 0.0)
    w = refs[p][...]
    b = refs[p + 1][...]
    o_ref[...] = jnp.dot(h, w, preferred_element_type=jnp.float32) + b


def fused_mlp(x, hidden_layers, out_wb):
    M, Din = x.shape
    w_o, b_o = out_wb
    Dout = w_o.shape[1]
    TM = _row_block(M)
    args = [x]
    in_specs = [pl.BlockSpec((TM, Din), lambda i: (i, 0))]
    for w, b in hidden_layers:
        args += [w, b.reshape(1, -1)]
        in_specs += [pl.BlockSpec(w.shape, lambda i: (0, 0)),
                     pl.BlockSpec((1, w.shape[1]), lambda i: (0, 0))]
    args += [w_o, b_o.reshape(1, -1)]
    in_specs += [pl.BlockSpec(w_o.shape, lambda i: (0, 0)),
                 pl.BlockSpec((1, Dout), lambda i: (0, 0))]
    return pl.pallas_call(
        functools.partial(_fused_mlp_kernel, n_hidden=len(hidden_layers)),
        out_shape=jax.ShapeDtypeStruct((M, Dout), jnp.float32),
        grid=(M // TM,),
        in_specs=in_specs,
        out_specs=pl.BlockSpec((TM, Dout), lambda i: (i, 0)),
        compiler_params=pltpu.CompilerParams(dimension_semantics=("parallel",)),
    )(*args)


# ---------------------------------------------------------------------------
# Parameter init (deterministic, shapes follow the PyTorch module's __init__).
# ---------------------------------------------------------------------------
def init_params(key, vocab_size, emb_size, hidden_size, layers_num,
                linear_size, label_size, padding_idx=0):
    keys = iter(jax.random.split(key, 128))

    def u(shape, scale):
        return jax.random.uniform(next(keys), shape, jnp.float32, -scale, scale)

    params = {}
    emb = jax.random.normal(next(keys), (vocab_size, emb_size), jnp.float32) * 0.1
    params['emb'] = emb.at[padding_idx].set(0.0)           # nn.Embedding padding row

    k = 1.0 / float(hidden_size) ** 0.5                    # PyTorch LSTM init range
    lstm = []
    for layer in range(layers_num):
        d_in = emb_size if layer == 0 else 2 * hidden_size
        dirs = []
        for _ in range(2):                                 # forward / backward
            w_ih = u((d_in, 4 * hidden_size), k)           # stored transposed
            w_hh = u((hidden_size, 4 * hidden_size), k)
            bias = u((4 * hidden_size,), k) + u((4 * hidden_size,), k)  # b_ih + b_hh
            dirs.append((w_ih, w_hh, bias))
        lstm.append(dirs)
    params['lstm'] = lstm

    D = 2 * hidden_size
    lim = (6.0 / (D + label_size)) ** 0.5                  # xavier_uniform
    params['attn_w'] = u((label_size, D), lim)

    sizes = [D] + list(linear_size)
    hidden_layers = []
    for i_s, o_s in zip(sizes[:-1], sizes[1:]):
        lim = (6.0 / (i_s + o_s)) ** 0.5
        hidden_layers.append((u((i_s, o_s), lim), u((o_s,), 1.0 / i_s ** 0.5)))
    params['mlp_hidden'] = hidden_layers
    lim = (6.0 / (sizes[-1] + label_size)) ** 0.5
    params['mlp_out'] = (u((sizes[-1], label_size), lim),
                         u((label_size,), 1.0 / sizes[-1] ** 0.5))
    return params


# ---------------------------------------------------------------------------
# Full forward pass (eval mode: dropouts are identity).
# ---------------------------------------------------------------------------
def attention_rnn_forward(params, token_ids, hidden_size, padding_idx=0):
    H = hidden_size
    # Embedding lookup (gather) kept in plain JAX glue.
    # TODO(synk): torch truncates to lengths.max(); shapes are static in JAX and the
    # example inputs contain a full-length row, so the truncation is a no-op here.
    emb_out = params['emb'][token_ids]                         # (N, T, E)
    mask = (token_ids != padding_idx).astype(jnp.float32)      # (N, T)
    lens_col = jnp.sum(mask, axis=1, keepdims=True)            # (N, 1) float32

    N, T, E = emb_out.shape
    x_tm = jnp.transpose(emb_out, (1, 0, 2))                   # time-major once: (T, N, E)

    prev_f = prev_b = None
    for li, (fwd_p, bwd_p) in enumerate(params['lstm']):
        w_ih_f, w_hh_f, b_f = fwd_p
        w_ih_b, w_hh_b, b_b = bwd_p
        if li == 0:
            x_flat = x_tm.reshape(T * N, E)
            gxf = multi_dense([x_flat], [w_ih_f], b_f)         # (T*N, 4H) pre-gates
            gxb = multi_dense([x_flat], [w_ih_b], b_b)
        else:
            # layer input is cat(prev_fwd, prev_bwd); split W_ih rows instead of
            # materializing the concatenation.
            xf_flat = prev_f.reshape(T * N, H)
            xb_flat = prev_b.reshape(T * N, H)
            gxf = multi_dense([xf_flat, xb_flat], [w_ih_f[:H], w_ih_f[H:]], b_f)
            gxb = multi_dense([xf_flat, xb_flat], [w_ih_b[:H], w_ih_b[H:]], b_b)
        gxf = gxf.reshape(T, N, 4 * H)
        gxb = gxb.reshape(T, N, 4 * H)
        prev_f, prev_b = bilstm_layer(gxf, gxb, w_hh_f, w_hh_b, lens_col, H)

    rnn_tm = jnp.concatenate([prev_f, prev_b], axis=-1)        # (T, N, 2H) — once
    rnn_bm = jnp.transpose(rnn_tm, (1, 0, 2))                  # back to batch-major once

    attn_out = ml_attention(rnn_bm, mask, params['attn_w'])    # (N, L, 2H)

    L = attn_out.shape[1]
    h = attn_out.reshape(N * L, 2 * H)
    out = fused_mlp(h, params['mlp_hidden'], params['mlp_out'])  # (N*L, label_size)
    out = out.reshape(N, L, -1)
    if out.shape[-1] == 1:                                     # torch.squeeze(-1)
        out = jnp.squeeze(out, -1)
    return out


if __name__ == "__main__":
    # AttentionRNN hyper-params (use_spn=False -> label_size == labels_num)
    labels_num = 8
    emb_size = 32
    hidden_size = 32
    layers_num = 2
    linear_size = [32]
    vocab_size = 50
    N, T = 4, 16

    key = jax.random.PRNGKey(0)
    k_par, k_tok = jax.random.split(key)
    params = init_params(k_par, vocab_size, emb_size, hidden_size, layers_num,
                         linear_size, labels_num)

    tok = jax.random.randint(k_tok, (N, T), 1, vocab_size, dtype=jnp.int32)
    lengths = jnp.array([T, 12, 9, T], dtype=jnp.int32)        # max == T (see TODO above)
    pos = jnp.arange(T)[None, :]
    tok = jnp.where(pos < lengths[:, None], tok, 0)            # padding_idx = 0

    out = attention_rnn_forward(params, tok, hidden_size)
    out = jax.block_until_ready(out)
    assert out.shape == (N, labels_num, labels_num), out.shape
    assert jnp.all(jnp.isfinite(out))
    print("KERNEL_OK")
</pallas_src>

<mosaic_0001>
module attributes {stable_mosaic.version = 11 : i64} {
  func.func @_multi_dense_kernel(%arg0: i32, %arg1: memref<64x32xf32, #tpu.memory_space<vmem>>, %arg2: memref<32x128xf32, #tpu.memory_space<vmem>>, %arg3: memref<1x128xf32, #tpu.memory_space<vmem>>, %arg4: memref<64x128xf32, #tpu.memory_space<vmem>>) attributes {dimension_semantics = [#tpu.dimension_semantics<parallel>], iteration_bounds = array<i64: 1>, scalar_prefetch = 0 : i64, scratch_operands = 0 : i64, tpu.core_type = #tpu.core_type<tc>, window_params = [{transform_indices = @transform_0, window_bounds = array<i64: 64, 32>}, {pipeline_mode = #tpu.pipeline_mode<synchronous>, transform_indices = @transform_1, window_bounds = array<i64: 32, 128>}, {pipeline_mode = #tpu.pipeline_mode<synchronous>, transform_indices = @transform_2, window_bounds = array<i64: 1, 128>}, {transform_indices = @transform_3, window_bounds = array<i64: 64, 128>}]} {
    %c0 = arith.constant 0 : index
    %c0_0 = arith.constant 0 : index
    %0 = vector.load %arg1[%c0, %c0_0] : memref<64x32xf32, #tpu.memory_space<vmem>>, vector<64x32xf32>
    %c0_1 = arith.constant 0 : index
    %c0_2 = arith.constant 0 : index
    %1 = vector.load %arg2[%c0_1, %c0_2] : memref<32x128xf32, #tpu.memory_space<vmem>>, vector<32x128xf32>
    %cst = arith.constant dense<0.000000e+00> : vector<64x128xf32>
    %2 = tpu.matmul %0, %1, %cst {dimension_numbers = #tpu.dot_dimension_numbers<[1], [0], [0], [1], [0, 0, 1, 1], [], []>} : vector<64x32xf32>, vector<32x128xf32>, vector<64x128xf32> -> vector<64x128xf32>
    %c0_3 = arith.constant 0 : index
    %c0_4 = arith.constant 0 : index
    %3 = vector.load %arg3[%c0_3, %c0_4] : memref<1x128xf32, #tpu.memory_space<vmem>>, vector<1x128xf32>
    %4 = vector.broadcast %3 : vector<1x128xf32> to vector<64x128xf32>
    %5 = arith.addf %2, %4 : vector<64x128xf32>
    %c0_5 = arith.constant 0 : index
    %c0_6 = arith.constant 0 : index
    %6 = vector.load %arg4[%c0_5, %c0_6] : memref<64x128xf32, #tpu.memory_space<vmem>>, vector<64x128xf32>
    tpu.vector_store %arg4[%c0_5, %c0_6], %5 {strides = array<i32>} : memref<64x128xf32, #tpu.memory_space<vmem>>, vector<64x128xf32>,
    return
  }
  func.func @transform_0(%arg0: i32) -> (i32, i32) {
    %c0_i32 = arith.constant 0 : i32
    %c0_i32_0 = arith.constant 0 : i32
    return %arg0, %c0_i32 : i32, i32
  }
  func.func @transform_1(%arg0: i32) -> (i32, i32) {
    %c0_i32 = arith.constant 0 : i32
    %c0_i32_0 = arith.constant 0 : i32
    %c0_i32_1 = arith.constant 0 : i32
    return %c0_i32, %c0_i32_0 : i32, i32
  }
  func.func @transform_2(%arg0: i32) -> (i32, i32) {
    %c0_i32 = arith.constant 0 : i32
    %c0_i32_0 = arith.constant 0 : i32
    %c0_i32_1 = arith.constant 0 : i32
    return %c0_i32, %c0_i32_0 : i32, i32
  }
  func.func @transform_3(%arg0: i32) -> (i32, i32) {
    %c0_i32 = arith.constant 0 : i32
    %c0_i32_0 = arith.constant 0 : i32
    return %arg0, %c0_i32 : i32, i32
  }
}

</mosaic_0001>

<bundles_post_ra>
// kernel: tpu_custom_call.1
= control target key start
LH: loop header
LB: loop body
LE: loop exit
PB: predicated region body
PF: predicated region fallthrough
CT: control target
= control target key end

     0   :  { %s335_s0 = inlined_call_operand.vmem [shape: f32[64,32], index: 0, kind: input, shape index: {}]   ;;  %s336_s1 = inlined_call_operand.vmem [shape: f32[32,128], index: 1, kind: input, shape index: {}]   ;;  %s337_s2 = inlined_call_operand.vmem [shape: f32[1,128], index: 2, kind: input, shape index: {}]   ;;  %s338_s3 = inlined_call_operand.hbm [shape: f32[64,128], index: 3, kind: output, shape index: {}]  }
   0x1   :  { %v26_v0 = vld [vmem:[%s336_s1 + $0x18] sm:$0xff]  ;;  %v25_v1 = vld [vmem:[%s336_s1 + $0x10] sm:$0xff]  ;;  %v24_v2 = vld [vmem:[%s336_s1 + $0x8] sm:$0xff] }
   0x2   :  { %209 = vmatprep.subr.mxu0 %v26_v0  ;;  %229 = vmatprep.subr.mxu1 %v26_v0  ;;  %v23_v3 = vld [vmem:[%s336_s1] sm:$0xff] }
   0x3   :  { %210 = vmatpush3.msra.mxu0 %v26_v0  ;;  %233 = vmatpush3.msra.mxu1 %v26_v0 }
   0x4   :  { %211 = vmatprep.subr.mxu0 %v25_v1  ;;  %230 = vmatprep.subr.mxu1 %v25_v1 }
   0x5   :  { %212 = vmatpush3.msra.mxu0 %v25_v1  ;;  %234 = vmatpush3.msra.mxu1 %v25_v1 }
   0x6   :  { %8 = vsyncpa [#allocation3], 0  ;;  %213 = vmatprep.subr.mxu0 %v24_v2  ;;  %231 = vmatprep.subr.mxu1 %v24_v2  ;;  %v15_v4 = vld [vmem:[%s335_s0] sm:$0xff]  ;;  %vm34_vm0 = vcmask 261120   ;;  %v16_v6 = vld [vmem:[%s335_s0 + $0x8] sm:$0xff]  ;;  %s262_s10 = smov [#allocation2]  }
   0x7   :  { %214 = vmatpush3.msra.mxu0 %v24_v2  ;;  %235 = vmatpush3.msra.mxu1 %v24_v2  ;;  %v19_v5 = vld [vmem:[%s335_s0 + $0x20] sm:$0xff]  ;;  %v20_v7 = vld [vmem:[%s335_s0 + $0x28] sm:$0xff]  ;;  %v17_v8 = vld [vmem:[%s335_s0 + $0x10] sm:$0xff] }
   0x8   :  { %215 = vmatprep.subr.mxu0 %v23_v3  ;;  %232 = vmatprep.subr.mxu1 %v23_v3  ;;  %v21_v9 = vld [vmem:[%s335_s0 + $0x30] sm:$0xff]  ;;  %v18_v10 = vld [vmem:[%s335_s0 + $0x18] sm:$0xff]  ;;  %v188_v12 = vld [vmem:[%s337_s2] ss:$0 sm:$0xff] }
   0x9   :  { %216 = vmatpush3.msra.mxu0 %v23_v3  ;;  %236 = vmatpush3.msra.mxu1 %v23_v3  ;;  %v22_v11 = vld [vmem:[%s335_s0 + $0x38] sm:$0xff]  ;;  %s177_s0 = sshll.u32 %s262_s10, 4  ;;  %s178_s0 = int_to_ptr.vmem [resolvable:$true] %s177_s0 }
   0xa   :  { %217 = vmatprep.mubr.msk.f32.mxu0 %vm34_vm0, %v15_v4  ;;  %223 = vmatprep.mubr.msk.f32.mxu1 %vm34_vm0, %v19_v5  ;;  %s240_s2 = scalar_lea.vmem %s178_s0, 1024  ;;  %p245_p1 = scmp.lt.s32.totalorder %s178_s0, %s178_s0 }
   0xb   :  { %218 = vmatmul.mubr.msk.f32.vlgmr.msra.gmra.mxu0 %vm34_vm0, %v16_v6  ;;  %224 = vmatmul.mubr.msk.f32.vlgmr.msra.gmra.mxu1 %vm34_vm0, %v20_v7  ;;  %p241_p0 = scmp.ne.s32.totalorder %s178_s0, %s240_s2  ;;  %p246_p2 = scmp.lt.s32.totalorder %s240_s2, %s240_s2 }
   0xc   :  { %220 = vmatprep.mubr.msk.f32.mxu0 %vm34_vm0, %v17_v8  ;;  %226 = vmatprep.mubr.msk.f32.mxu1 %vm34_vm0, %v21_v9 }
   0xd   :  { %p247_p3 = por %p246_p2, %p245_p1 }
   0xf   :  { %221 = vmatmul.mubr.msk.f32.gmra.mxu0 %vm34_vm0, %v18_v10  ;;  %227 = vmatmul.mubr.msk.f32.gmra.mxu1 %vm34_vm0, %v22_v11  ;;  %p248_p4 = pnand %p247_p3, %p241_p0 }
  0xcb   :  { %v219_v13 = vpop.f32.mrf.mxu0  ;;  %v225_v14 = vpop.f32.mrf.mxu1 }
  0xcc   :  { %v131_v15 = vadd.f32 %v219_v13, %v188_v12  ;;  %v151_v16 = vadd.f32 %v225_v14, %v188_v12 }
  0xcd   :  { %v125_v17 = vpop.f32.mrf.mxu0  ;;  %v145_v18 = vpop.f32.mrf.mxu1 }
  0xce   :  { %165 = vst [vmem:[#allocation2 + $0x8] sm:$0xff] %v131_v15  ;;  %169 = vst [vmem:[#allocation2 + $0x28] sm:$0xff] %v151_v16  ;;  %v126_v19 = vadd.f32 %v188_v12, %v125_v17  ;;  %v146_v20 = vadd.f32 %v188_v12, %v145_v18 }
  0xcf   :  { %v222_v21 = vpop.f32.mrf.mxu0  ;;  %v228_v22 = vpop.f32.mrf.mxu1 }
  0xd0   :  { %164 = vst [vmem:[#allocation2] sm:$0xff] %v126_v19  ;;  %168 = vst [vmem:[#allocation2 + $0x20] sm:$0xff] %v146_v20  ;;  %v141_v23 = vadd.f32 %v222_v21, %v188_v12  ;;  %v161_v24 = vadd.f32 %v228_v22, %v188_v12 }
  0xd1   :  { %v135_v25 = vpop.f32.mrf.mxu0  ;;  %v155_v26 = vpop.f32.mrf.mxu1 }
  0xd2   :  { %167 = vst [vmem:[#allocation2 + $0x18] sm:$0xff] %v141_v23  ;;  %171 = vst [vmem:[#allocation2 + $0x38] sm:$0xff] %v161_v24  ;;  %v136_v27 = vadd.f32 %v188_v12, %v135_v25  ;;  %v156_v28 = vadd.f32 %v188_v12, %v155_v26 }
  0xd4   :  { %166 = vst [vmem:[#allocation2 + $0x10] sm:$0xff] %v136_v27  ;;  %170 = vst [vmem:[#allocation2 + $0x30] sm:$0xff] %v156_v28 }
  0xd5   :  { %251 = shalt.err (!%p248_p4)
}
  0xd6   :  { %s263_s11 = smov 128   ;;  %s264_s12 = smov 8  }
  0xd7   :  { %183 = dma.vmem_to_hbm [thread:$0]  %s178_s0, 1024, %s338_s3, [#allocation3], %s263_s11, %s263_s11, %s264_s12  }
  0xd8   :  { %260 = dma.done.wait [#allocation3], 1024  }
  0xd9   :  { %261 = vsyncadd [#allocation3], 4294966272 }
  0xda   :  { %187 = vsyncpa [#allocation3], 1 }

</bundles_post_ra>
